<compile_context>
chip_gen: v7x
topology: tpu7x:2x2x1
jax: 0.10.0
libtpu: 0.0.40
codegen_flags: <defaults>
</compile_context>

<pallas_src>
import functools

import jax
import jax.numpy as jnp
from jax.experimental import pallas as pl
from jax.experimental.pallas import tpu as pltpu


def _build_position_encodings(d_model: int, seq_len: int) -> jnp.ndarray:
    """Reproduce the PyTorch buffer exactly (it multiplies by 10000^(2i/d), matching the
    reference code as written; requires even d_model, same as the reference)."""
    positions = jnp.arange(0, seq_len, dtype=jnp.float32)[:, None]        # (S, 1)
    even_odd_i = jnp.arange(0, d_model, 2, dtype=jnp.float32)             # (D/2,)
    div_freqs_term = jnp.power(10000.0, even_odd_i / d_model)             # (D/2,)
    pe = jnp.zeros((seq_len, d_model), dtype=jnp.float32)
    pe = pe.at[:, 0::2].set(jnp.sin(positions * div_freqs_term))
    pe = pe.at[:, 1::2].set(jnp.cos(positions * div_freqs_term))
    return pe[None, :, :]                                                  # (1, S, D)


# ----------------------------------------------------------------------------- kernels
def _pe_add_kernel(x_ref, pe_ref, o_ref):
    """Eval mode / p == 0: out = x + pe. Blocks are (1, TR, C), C a multiple of 128."""
    o_ref[...] = (x_ref[...] + pe_ref[...]).astype(o_ref.dtype)


def _pe_dropout_hwprng_kernel(seed_ref, x_ref, pe_ref, o_ref, *, thr, scale):
    """Training path on real TPU: dropout mask from the in-kernel hardware PRNG
    (zero extra HBM traffic). Keep-mask = uint32 threshold compare on raw bits."""
    y = x_ref[...] + pe_ref[...]
    r = pl.program_id(0)                      # row-tile index (outer)
    b = pl.program_id(1)                      # batch index   (inner)
    nb = pl.num_programs(1)
    # (r, b)-unique seed so every grid step draws an independent mask.
    pltpu.prng_seed(seed_ref[0] + r * nb + b)
    bits = pltpu.prng_random_bits(y.shape)
    if bits.dtype != jnp.uint32:
        bits = pltpu.bitcast(bits, jnp.uint32)
    keep = bits >= jnp.uint32(thr)
    o_ref[...] = jnp.where(keep, y * scale, jnp.zeros_like(y)).astype(o_ref.dtype)


def _pe_dropout_mask_kernel(x_ref, pe_ref, bits_ref, o_ref, *, thr, scale):
    """Portable training path (CPU / interpret checking): random bits streamed in."""
    y = x_ref[...] + pe_ref[...]
    keep = bits_ref[...] >= jnp.uint32(thr)
    o_ref[...] = jnp.where(keep, y * scale, jnp.zeros_like(y)).astype(o_ref.dtype)


# ----------------------------------------------------------------------------- helpers
def _choose_tile_rows(R: int, align: int, target: int) -> int:
    """Largest row-tile <= target that is a multiple of `align` and divides R, so every
    store is a full unmasked vst. Falls back to an aligned tile (masked last tile) only
    when no such divisor exists."""
    if R <= target:
        return R                               # full extent: always a legal block dim
    t = max(align, (target // align) * align)
    for tr in range(t, 0, -align):
        if R % tr == 0:
            return tr
    return t


def _on_tpu() -> bool:
    try:
        return jax.default_backend() == "tpu"
    except Exception:  # pragma: no cover
        return False


# ----------------------------------------------------------------------------- wrapper
def positional_encoding_forward(x: jnp.ndarray,
                                position_encodings: jnp.ndarray,
                                dropout_p: float,
                                seed: int = 0,
                                training: bool = True) -> jnp.ndarray:
    """x: (B, S, D). position_encodings: (1, S_full, D) with S_full >= S."""
    B, S, D = x.shape
    dropout_p = float(dropout_p)
    apply_dropout = bool(training) and dropout_p > 0.0
    if apply_dropout and dropout_p >= 1.0:
        # torch.nn.Dropout(p=1) zeroes everything in training; avoid 1/(1-p) = inf.
        return jnp.zeros_like(x)

    # Pre-cast the PE slice to x.dtype (halves the PE HBM read for bf16 activations).
    pe = position_encodings[:, :S, :].astype(x.dtype)                      # (1, S, D)

    # --- Lane-dense view: flatten each (S, D) slab, pad to a multiple of 128 lanes ---
    N = S * D
    LANES = 128
    n_pad_elems = (-N) % LANES
    Npad = N + n_pad_elems
    C = LANES
    while C < 512 and Npad % (2 * C) == 0:     # widen stores up to 512 lanes
        C *= 2
    R = Npad // C

    x2 = x.reshape(B, N)
    pe2 = pe.reshape(1, N)
    if n_pad_elems:
        # Pad x and pe together; the pad region is sliced off after the call
        # (<= 127 elements per batch slab -> negligible extra HBM traffic).
        x2 = jnp.pad(x2, ((0, 0), (0, n_pad_elems)))
        pe2 = jnp.pad(pe2, ((0, 0), (0, n_pad_elems)))
    x2 = x2.reshape(B, R, C)
    pe2 = pe2.reshape(1, R, C)

    # --- Row tile: ~2 MiB blocks, dtype-aware sublane alignment, exact divisor of R ---
    itemsize = jnp.dtype(x.dtype).itemsize
    align = max(8, 32 // itemsize)             # f32: 8, bf16: 16, int8/fp8: 32 sublanes
    target_rows = max(align, (2 << 20) // (C * itemsize))
    TR = _choose_tile_rows(R, align, target_rows)
    num_r = pl.cdiv(R, TR)
    block = (1, TR, C)

    flops = B * Npad
    bytes_accessed = (2 * B + 1) * Npad * itemsize          # x read + out write + pe read

    if not apply_dropout:
        kernel = _pe_add_kernel
        grid_spec = pltpu.PrefetchScalarGridSpec(
            num_scalar_prefetch=0,
            # seq-tile axis OUTER, batch INNER: the PE block index is constant across the
            # inner loop, so the PE tile stays resident in VMEM (no re-DMA per batch).
            grid=(num_r, B),
            in_specs=[
                pl.BlockSpec(block, lambda r, b: (b, r, 0)),               # x
                pl.BlockSpec(block, lambda r, b: (0, r, 0)),               # pe
            ],
            out_specs=pl.BlockSpec(block, lambda r, b: (b, r, 0)),
        )
        args = (x2, pe2)
    else:
        thr = min(int(round(dropout_p * (1 << 32))), (1 << 32) - 1)
        scale = 1.0 / (1.0 - dropout_p)
        flops = 3 * B * Npad
        if _on_tpu():
            # In-kernel hardware PRNG: the dropout mask costs zero extra HBM traffic.
            kernel = functools.partial(_pe_dropout_hwprng_kernel, thr=thr, scale=scale)
            seed_arr = jnp.asarray([seed], dtype=jnp.int32)
            grid_spec = pltpu.PrefetchScalarGridSpec(
                num_scalar_prefetch=1,
                grid=(num_r, B),
                in_specs=[
                    pl.BlockSpec(block, lambda r, b, s: (b, r, 0)),        # x
                    pl.BlockSpec(block, lambda r, b, s: (0, r, 0)),        # pe
                ],
                out_specs=pl.BlockSpec(block, lambda r, b, s: (b, r, 0)),
            )
            args = (seed_arr, x2, pe2)
        else:
            # Portable fallback (pltpu.prng_* only lowers through Mosaic): pre-generate
            # the raw uint32 bits with jax.random and stream them in lane-dense.
            bits = jax.random.bits(jax.random.PRNGKey(seed), (B, R, C), dtype=jnp.uint32)
            kernel = functools.partial(_pe_dropout_mask_kernel, thr=thr, scale=scale)
            grid_spec = pltpu.PrefetchScalarGridSpec(
                num_scalar_prefetch=0,
                grid=(num_r, B),
                in_specs=[
                    pl.BlockSpec(block, lambda r, b: (b, r, 0)),           # x
                    pl.BlockSpec(block, lambda r, b: (0, r, 0)),           # pe
                    pl.BlockSpec(block, lambda r, b: (b, r, 0)),           # bits
                ],
                out_specs=pl.BlockSpec(block, lambda r, b: (b, r, 0)),
            )
            args = (x2, pe2, bits)
            bytes_accessed += B * Npad * 4

    out = pl.pallas_call(
        kernel,
        out_shape=jax.ShapeDtypeStruct((B, R, C), x.dtype),
        grid_spec=grid_spec,
        compiler_params=pltpu.CompilerParams(
            # Both axes are fully independent (disjoint output blocks, per-step PRNG
            # reseed) -> let the v7x megacore shard either one. Free on v5e/v6e.
            dimension_semantics=("parallel", "parallel"),
            # ~2 MiB blocks x 3-4 refs x 2 buffers ~= 12-16 MiB; raises v5e's 16 MiB
            # scoped default and stays well inside v7x's 64 MiB physical VMEM.
            vmem_limit_bytes=32 << 20,
        ),
        cost_estimate=pl.CostEstimate(
            flops=flops, transcendentals=0, bytes_accessed=bytes_accessed),
        # TODO(synk): if an xprof trace on v7x shows exposed DMA between grid steps, add
        # pipeline_mode=pl.Buffered(3) to the x/out BlockSpecs (keep pe at 2).
    )(*args)

    out = out.reshape(B, Npad)
    if n_pad_elems:
        out = out[:, :N]
    return out.reshape(B, S, D)


if __name__ == "__main__":
    # Small shapes implied by the forward: (batch, seq_len, d_model)
    B, S, D = 2, 8, 32
    dropout_p = 0.1

    key = jax.random.PRNGKey(0)
    x = jax.random.normal(key, (B, S, D), dtype=jnp.float32)
    pe = _build_position_encodings(d_model=D, seq_len=S)

    # Deterministic check against the pure-JAX reference with dropout disabled (eval mode).
    out_eval = positional_encoding_forward(x, pe, dropout_p, seed=0, training=False)
    out_eval = jax.block_until_ready(out_eval)
    ref_eval = x + pe[:, :S, :]
    assert jnp.allclose(out_eval, ref_eval, atol=1e-6), "eval-mode mismatch"

    # Non-128-multiple d_model exercises the padded lane-dense path.
    D2 = 20
    x_pad = jax.random.normal(jax.random.PRNGKey(1), (B, S, D2), dtype=jnp.float32)
    pe_pad = _build_position_encodings(d_model=D2, seq_len=S)
    out_pad = positional_encoding_forward(x_pad, pe_pad, dropout_p, seed=0, training=False)
    out_pad = jax.block_until_ready(out_pad)
    assert jnp.allclose(out_pad, x_pad + pe_pad[:, :S, :], atol=1e-6), "padded-path mismatch"

    # Training mode (dropout active).
    out_train = positional_encoding_forward(x, pe, dropout_p, seed=42, training=True)
    out_train = jax.block_until_ready(out_train)
    assert out_train.shape == (B, S, D)

    # Every output element must be either 0 (dropped) or (x+pe)/(1-p) (kept & rescaled).
    scaled_ref = ref_eval / (1.0 - dropout_p)
    is_zero = jnp.isclose(out_train, 0.0, atol=1e-6)
    is_scaled = jnp.isclose(out_train, scaled_ref, rtol=1e-5, atol=1e-6)
    assert bool(jnp.all(is_zero | is_scaled)), "dropout semantics mismatch"

    print("KERNEL_OK")
</pallas_src>

<mosaic_0001>
module attributes {stable_mosaic.version = 11 : i64} {
  func.func @_pe_add_kernel(%arg0: i32, %arg1: i32, %arg2: memref<1x1x256xf32, #tpu.memory_space<vmem>>, %arg3: memref<1x1x256xf32, #tpu.memory_space<vmem>>, %arg4: memref<1x1x256xf32, #tpu.memory_space<vmem>>) attributes {dimension_semantics = [#tpu.dimension_semantics<parallel>, #tpu.dimension_semantics<parallel>], iteration_bounds = array<i64: 1, 2>, scalar_prefetch = 0 : i64, scratch_operands = 0 : i64, tpu.core_type = #tpu.core_type<tc>, window_params = [{transform_indices = @transform_0, window_bounds = array<i64: 1, 1, 256>}, {transform_indices = @transform_1, window_bounds = array<i64: 1, 1, 256>}, {transform_indices = @transform_2, window_bounds = array<i64: 1, 1, 256>}]} {
    %c0 = arith.constant 0 : index
    %c0_0 = arith.constant 0 : index
    %c0_1 = arith.constant 0 : index
    %0 = vector.load %arg2[%c0, %c0_0, %c0_1] : memref<1x1x256xf32, #tpu.memory_space<vmem>>, vector<1x1x256xf32>
    %c0_2 = arith.constant 0 : index
    %c0_3 = arith.constant 0 : index
    %c0_4 = arith.constant 0 : index
    %1 = vector.load %arg3[%c0_2, %c0_3, %c0_4] : memref<1x1x256xf32, #tpu.memory_space<vmem>>, vector<1x1x256xf32>
    %2 = arith.addf %0, %1 : vector<1x1x256xf32>
    %c0_5 = arith.constant 0 : index
    %c0_6 = arith.constant 0 : index
    %c0_7 = arith.constant 0 : index
    %3 = vector.load %arg4[%c0_5, %c0_6, %c0_7] : memref<1x1x256xf32, #tpu.memory_space<vmem>>, vector<1x1x256xf32>
    tpu.vector_store %arg4[%c0_5, %c0_6, %c0_7], %2 {strides = array<i32>} : memref<1x1x256xf32, #tpu.memory_space<vmem>>, vector<1x1x256xf32>,
    return
  }
  func.func @transform_0(%arg0: i32, %arg1: i32) -> (i32, i32, i32) {
    %c0_i32 = arith.constant 0 : i32
    %c0_i32_0 = arith.constant 0 : i32
    return %arg1, %arg0, %c0_i32 : i32, i32, i32
  }
  func.func @transform_1(%arg0: i32, %arg1: i32) -> (i32, i32, i32) {
    %c0_i32 = arith.constant 0 : i32
    %c0_i32_0 = arith.constant 0 : i32
    %c0_i32_1 = arith.constant 0 : i32
    return %c0_i32, %arg0, %c0_i32_0 : i32, i32, i32
  }
  func.func @transform_2(%arg0: i32, %arg1: i32) -> (i32, i32, i32) {
    %c0_i32 = arith.constant 0 : i32
    %c0_i32_0 = arith.constant 0 : i32
    return %arg1, %arg0, %c0_i32 : i32, i32, i32
  }
}

</mosaic_0001>

<bundles_post_ra>
// kernel: tpu_custom_call.1
= control target key start
LH: loop header
LB: loop body
LE: loop exit
PB: predicated region body
PF: predicated region fallthrough
CT: control target
= control target key end

     0   :  { %7 = vsyncpa [#allocation3], 0  ;;  %s705_s0 = inlined_call_operand.hbm [shape: f32[2,1,256], index: 0, kind: input, shape index: {}]   ;;  %s706_s1 = inlined_call_operand.vmem [shape: f32[1,1,256], index: 1, kind: input, shape index: {}]   ;;  %s707_s2 = inlined_call_operand.hbm [shape: f32[2,1,256], index: 2, kind: output, shape index: {}]  }
   0x1   :  { %9 = vsyncpa [#allocation3 + $0x1], 0 }
   0x2   :  { %10 = vsyncpa [#allocation4], 0 }
   0x3   :  { %12 = vsyncpa [#allocation4 + $0x1], 0  ;;  %s530_s9 = smov 0   ;;  %s532_s10 = smov 0  }
   0x4   :  { %s534_s11 = smov 0   ;;  %s536_s12 = smov 0  }
   0x5   :  { %s538_s13 = smov 0   ;;  %s540_s14 = smov 0  }
   0x6 LB: > { %s319_s15 = sadd.s32 4294967295, %s511_s14   ;;  %s320_s16 = sadd.s32 4294967294, %s511_s14   ;;  %s511_s14 = sphi %s540_s14, %s18_s14   ;;  %s507_s13 = sphi %s538_s13, %s723_s13   ;;  %s503_s12 = sphi %s536_s12, %s722_s12   ;;  %s499_s11 = sphi %s534_s11, %s721_s11   ;;  %s495_s10 = sphi %s532_s10, %s720_s10   ;;  %s491_s9 = sphi %s530_s9, %s719_s9  }
   0x7   : > { %s27_s17 = sadd.s32 1, %s507_s13  ;;  %s39_s18 = sadd.s32 1, %s499_s11 }
   0x8   : > { %p28_p0 = scmp.ge.s32.totalorder %s27_s17, 2  ;;  %p46_p1 = scmp.ne.s32.totalorder %s499_s11, %s495_s10 }
   0x9   : > { %p47_p2 = scmp.eq.s32.totalorder %s511_s14, 0  ;;  %p52_p3 = scmp.ne.s32.totalorder %s495_s10, %s491_s9 }
   0xa   : > { %s725_s17 = smov (%p28_p0, %s27_s17), 0  ;;  %p53_p5 = scmp.eq.s32.totalorder %s319_s15, 0 }
   0xb   : > { %p571_p4 = por %p47_p2, %p46_p1  ;;  %s34_s20 = ssub.s32 %s507_s13, %s725_s17 }
   0xc   : > { %p104_p6 = scmp.eq.s32.totalorder %s319_s15, 1  ;;  %p37_p7 = scmp.eq.s32.totalorder %s34_s20, 0 }
   0xd   : > { %p577_p8 = por %p53_p5, %p52_p3  ;;  %p110_p10 = scmp.eq.s32.totalorder %s320_s16, 1 }
   0xe   : > { %p581_p9 = por %p104_p6, %p46_p1  ;;  %p349_p13 = scmp.lt.s32.totalorder %s511_s14, 2 }
   0xf   : > { %s586_s23 = scalar_select %p37_p7, %s499_s11, %s39_s18  }
  0x10   : > { %s711_s22 = scalar_select %p581_p9, 1, 0 }
  0x11   : > { %p588_p11 = por %p110_p10, %p52_p3  ;;  %s137_s25 = sand.u32 1, %s499_s11  }
  0x12   : > { %s324_s26 = sshll.u32 %s137_s25, 1  ;;  %s335_s27 = sshll.u32 %s507_s13, 5 }
  0x13   : > { %s712_s24 = scalar_select %p588_p11, 1, 0 }
  0x14   : > { %s599_s30 = scalar_lea.hbm %s705_s0, %s335_s27  ;;  %s141_s3 = scalar_lea.vmem [#allocation2], %s324_s26 }
  0x15   : > { %s151_s4 = sshll.u32 %s141_s3, 4  ;;  %p605_p0 = pnand %p349_p13, %p571_p4  ;;  %s601_s4 = int_to_ptr.vmem [resolvable:$true] %s151_s4 }
  0x16   : > { %s138_s6 = scalar_lea.sflag [#allocation3], %s137_s25  ;;  %s399_s7 = scalar_lea.hbm %s599_s30, 32 }
  0x17   : > { %p400_p3 = scmp.ne.s32.totalorder %s599_s30, %s399_s7  ;;  %p401_p5 = pneg %p605_p0 }
  0x18   : > { %s404_s16 = scalar_lea.hbm %s705_s0, 64  ;;  %p405_p4 = scmp.lt.u32.totalorder %s599_s30, %s705_s0 }
  0x19   : > { %p402_p6 = pnand %p401_p5, %p400_p3  ;;  %p406_p10 = scmp.lt.u32.totalorder %s404_s16, %s399_s7 }
  0x1a   : > { %p408_p12 = scmp.lt.u32.totalorder %s399_s7, %s599_s30 }
  0x1b   : > { %p403_p7 = pneg %p402_p6  ;;  %p407_p13 = por %p406_p10, %p405_p4 }
  0x1d   : > { %p409_p1 = por %p408_p12, %p407_p13 }
  0x1f   : > { %p410_p2 = pnand %p409_p1, %p403_p7 }
  0x21   : > { %413 = shalt.err (!%p410_p2)
}
  0x22   : > { %s414_s20 = scalar_lea.vmem %s601_s4, 32  ;;  %s513_s25 = smov [#allocation2]  }
  0x23   : > { %p415_p3 = scmp.ne.s32.totalorder %s601_s4, %s414_s20  ;;  %s419_s26 = sshll.u32 %s513_s25, 4  ;;  %s420_s26 = int_to_ptr.vmem [resolvable:$false] %s419_s26 }
  0x24   : > { %s421_s27 = scalar_lea.vmem %s420_s26, 64  ;;  %p422_p9 = scmp.lt.s32.totalorder %s601_s4, %s420_s26 }
  0x25   : > { %p417_p6 = pnand %p415_p3, %p401_p5  ;;  %p423_p4 = scmp.lt.s32.totalorder %s421_s27, %s414_s20 }
  0x27   : > { %p418_p11 = pneg %p417_p6  ;;  %p424_p10 = por %p423_p4, %p422_p9 }
  0x29   : > { %p425_p12 = pnand %p424_p10, %p418_p11 }
  0x2b   : > { %428 = shalt.err (!%p425_p12)
}
  0x2c   : > { %344 = dma.hbm_to_vmem [thread:$0]  (!%p605_p0), %s599_s30, 32, %s601_s4, %s138_s6  }
  0x2d   : > { %p714_p1 = scmp.lt.s32.totalorder %s511_s14, 3  ;;  %p715_p2 = scmp.ge.s32.totalorder %s511_s14, 1 }
  0x2f   : > { %p157_p5 = pnand %p715_p2, %p714_p1 }
  0x30   : > { %s641_s28 = sand.u32 (!%p157_p5), 1, %s495_s10  }
  0x31   : > { %160 = sbr.rel (%p157_p5) target bundleno = 83 (0x53), region = 28  ;;  %s328_s29 = sshll.u32 (!%p157_p5), %s641_s28, 1 }
  0x32   : > { %s163_s3 = scalar_lea.sflag (!%p157_p5), [#allocation3], %s641_s28  ;;  %s166_s7 = scalar_lea.vmem (!%p157_p5), [#allocation2], %s328_s29 }
  0x38   : > { %482 = dma.done.wait (%p577_p8), %s163_s3, 32  }
  0x39   : > { %484 = vsyncadd (%p577_p8), %s163_s3, 4294967264  ;;  %v198_v0 = vlaneseq  ;;  %s190_s30 = scalar_lea.vmem [#allocation5], %s328_s29  ;;  %s336_s5 = sshll.u32 %s503_s12, 5  ;;  %v195_v1 = vld [vmem:[%s166_s7] sm:$0x3] }
  0x3a   : > { %s220_s4 = sshll.u32 %s190_s30, 4  ;;  %v196_v2 = vld [vmem:[%s706_s1] sm:$0x3]  ;;  %s658_s21 = scalar_lea.hbm %s707_s2, %s336_s5  ;;  %s653_s4 = int_to_ptr.vmem [resolvable:$true] %s220_s4 }
  0x3b   : > { %vm200_vm0 = vcmp.lt.s32.totalorder %v198_v0, 256  ;;  %v197_v3 = vadd.f32 %v196_v2, %v195_v1  ;;  %s204_s18 = scalar_lea.sflag [#allocation4], %s641_s28  ;;  %s429_s12 = scalar_lea.vmem %s653_s4, 32 }
  0x3c   : > { %p430_p8 = scmp.ne.s32.totalorder %s653_s4, %s429_s12  ;;  %p716_p9 = scmp.ne.s32.totalorder %s711_s22, 0 }
  0x3d   : > { %202 = vst.msk [vmem:[%s190_s30] sm:$0x3] %vm200_vm0, %v197_v3  ;;  %s514_s19 = smov [#allocation5]  }
  0x3e   : > { %p431_p11 = pnand %p430_p8, %p716_p9  ;;  %s433_s20 = sshll.u32 %s514_s19, 4  ;;  %s434_s20 = int_to_ptr.vmem [resolvable:$false] %s433_s20 }
  0x3f   : > { %s435_s25 = scalar_lea.vmem %s434_s20, 64  ;;  %p436_p7 = scmp.lt.s32.totalorder %s653_s4, %s434_s20 }
  0x40   : > { %p432_p0 = pneg %p431_p11  ;;  %p437_p13 = scmp.lt.s32.totalorder %s435_s25, %s429_s12 }
  0x42   : > { %p438_p3 = por %p437_p13, %p436_p7 }
  0x44   : > { %p439_p6 = pnand %p438_p3, %p432_p0 }
  0x46   : > { %442 = shalt.err (!%p439_p6)
}
  0x47   : > { %s443_s26 = scalar_lea.hbm %s658_s21, 32  ;;  %s447_s29 = scalar_lea.hbm %s707_s2, 64 }
  0x48   : > { %p444_p4 = scmp.ne.s32.totalorder %s658_s21, %s443_s26  ;;  %p448_p1 = scmp.lt.u32.totalorder %s658_s21, %s707_s2 }
  0x49   : > { %p449_p2 = scmp.lt.u32.totalorder %s447_s29, %s443_s26  ;;  %p451_p8 = scmp.lt.u32.totalorder %s443_s26, %s658_s21 }
  0x4a   : > { %p445_p10 = pnand %p444_p4, %p716_p9 }
  0x4b   : > { %p450_p5 = por %p449_p2, %p448_p1 }
  0x4c   : > { %p446_p12 = pneg %p445_p10 }
  0x4d   : > { %p452_p11 = por %p451_p8, %p450_p5 }
  0x4f   : > { %p453_p0 = pnand %p452_p11, %p446_p12 }
  0x51   : > { %456 = shalt.err (!%p453_p0)
}
  0x52   : > { %339 = dma.vmem_to_hbm [thread:$0]  (%p716_p9), %s653_s4, 32, %s658_s21, %s204_s18  }
  0x53 PF: > { %s232_s30 = sand.u32 1, %s491_s9   ;;  %p717_p7 = scmp.ne.s32.totalorder %s712_s24, 0 }
  0x54   : > { %p718_p13 = scmp.ge.s32.totalorder %s511_s14, 2  ;;  %s233_s5 = scalar_lea.sflag [#allocation4], %s232_s30 }
  0x56   : > { %p346_p3 = pnand %p718_p13, %p717_p7 }
  0x58   : > { %486 = dma.done.wait (!%p346_p3), %s233_s5, 32  }
  0x59   : > { %488 = vsyncadd (!%p346_p3), %s233_s5, 4294967264  ;;  %s18_s14 = sadd.s32 1, %s511_s14   ;;  %s719_s9 = smov %s495_s10 }
  0x5a   : > { %p15_p6 = scmp.ge.s32.totalorder %s18_s14, 4   ;;  %s720_s10 = smov %s499_s11 }
  0x5b   : > { %s721_s11 = smov %s586_s23  ;;  %s722_s12 = smov %s507_s13 }
  0x5c   : > { %s723_s13 = smov %s725_s17  ;;  %17 = sbr.rel (!%p15_p6) target bundleno = 6 (0x6), region = 76 }
  0x63   :  { %238 = vsyncpa [#allocation3], 1 }
  0x64   :  { %240 = vsyncpa [#allocation3 + $0x1], 1 }
  0x65   :  { %241 = vsyncpa [#allocation4], 1 }
  0x66   :  { %243 = vsyncpa [#allocation4 + $0x1], 1 }

</bundles_post_ra>
